<compile_context>
chip_gen: v6e
topology: v6e:2x2x1
jax: 0.10.0
libtpu: 0.0.40
codegen_flags: <defaults>
</compile_context>

<pallas_src>
import jax
import jax.numpy as jnp
from jax.experimental import pallas as pl
from jax.experimental.pallas import tpu as pltpu


def _round_up(a: int, b: int) -> int:
    return ((a + b - 1) // b) * b


def _train_linear_kernel(x_ref, w_ref, b_ref, o_ref, acc_ref):
    """Computes one (tm, tn) output tile, reduced over the K grid axis (axis 2)."""
    k = pl.program_id(2)

    @pl.when(k == 0)
    def _():
        acc_ref[...] = jnp.zeros_like(acc_ref)

    # Sine activation in f32 (EUP), cast back to the input dtype so the MXU
    # operands stay narrow (bf16 in -> bf16 matmul); accumulate in f32.
    s = jnp.sin(x_ref[...].astype(jnp.float32)).astype(x_ref.dtype)
    acc_ref[...] += jnp.dot(s, w_ref[...], preferred_element_type=jnp.float32)

    @pl.when(k == pl.num_programs(2) - 1)
    def _():
        out = acc_ref[...] + b_ref[...].astype(jnp.float32)  # bias once per tile
        o_ref[...] = out.astype(o_ref.dtype)


def train_linear_forward(x, w_t, b, *, tm=512, tn=256, tk=512):
    """sin(x) @ w_t + b.

    x:   [..., num_inputs]
    w_t: [num_inputs, num_outputs]   (nn.Linear weight, pre-transposed)
    b:   [num_outputs]
    """
    orig_shape = x.shape
    K = orig_shape[-1]
    N = w_t.shape[1]
    x2d = x.reshape(-1, K)
    M = x2d.shape[0]

    # Clamp tiles to the (padded) problem size while keeping TPU alignment:
    # tm multiple of 8 (sublanes), tn/tk multiples of 128 (lanes / MXU width).
    tm = min(tm, _round_up(M, 8))
    tn = min(tn, _round_up(N, 128))
    tk = min(tk, _round_up(K, 128))

    Mp = _round_up(M, tm)
    Np = _round_up(N, tn)
    Kp = _round_up(K, tk)

    # Zero-pad ragged edges: sin(0) = 0 and zero weight rows/cols contribute
    # nothing to the matmul, so the padded region is discarded safely below.
    if (Mp, Kp) != (M, K):
        x2d = jnp.pad(x2d, ((0, Mp - M), (0, Kp - K)))
    if (Kp, Np) != (K, N):
        w_t = jnp.pad(w_t, ((0, Kp - K), (0, Np - N)))
    b_p = b if Np == N else jnp.pad(b, (0, Np - N))
    b2d = b_p.reshape(1, Np)

    grid = (Mp // tm, Np // tn, Kp // tk)

    flops = 2 * Mp * Np * Kp
    bytes_accessed = (
        x2d.size * x2d.dtype.itemsize
        + w_t.size * w_t.dtype.itemsize
        + b2d.size * b2d.dtype.itemsize
        + Mp * Np * jnp.dtype(x.dtype).itemsize
    )

    out = pl.pallas_call(
        _train_linear_kernel,
        out_shape=jax.ShapeDtypeStruct((Mp, Np), x.dtype),
        grid=grid,
        in_specs=[
            pl.BlockSpec((tm, tk), lambda i, j, k: (i, k)),   # x tile
            pl.BlockSpec((tk, tn), lambda i, j, k: (k, j)),   # W^T tile
            pl.BlockSpec((1, tn), lambda i, j, k: (0, j)),    # bias tile
        ],
        out_specs=pl.BlockSpec((tm, tn), lambda i, j, k: (i, j)),
        scratch_shapes=[pltpu.VMEM((tm, tn), jnp.float32)],   # f32 accumulator
        compiler_params=pltpu.CompilerParams(
            dimension_semantics=("parallel", "parallel", "arbitrary"),
            vmem_limit_bytes=48 * 1024 * 1024,  # headroom on v7x (64 MiB VMEM)
        ),
        cost_estimate=pl.CostEstimate(
            flops=flops, transcendentals=Mp * Kp, bytes_accessed=bytes_accessed
        ),
    )(x2d, w_t, b2d)

    return out[:M, :N].reshape(orig_shape[:-1] + (N,))


if __name__ == "__main__":
    # Small shapes consistent with the module: src [batch, seq, num_inputs]
    batch, seq, num_inputs, num_outputs = 2, 8, 32, 32

    key = jax.random.PRNGKey(0)
    kx, kw, kb = jax.random.split(key, 3)

    x = jax.random.normal(kx, (batch, seq, num_inputs), dtype=jnp.float32)

    # Deterministic nn.Linear-style init: U(-1/sqrt(fan_in), 1/sqrt(fan_in))
    bound = 1.0 / (num_inputs ** 0.5)
    w = jax.random.uniform(kw, (num_outputs, num_inputs),
                           minval=-bound, maxval=bound, dtype=jnp.float32)
    b = jax.random.uniform(kb, (num_outputs,),
                           minval=-bound, maxval=bound, dtype=jnp.float32)
    w_t = w.T  # [num_inputs, num_outputs]

    out = train_linear_forward(x, w_t, b)
    out = jax.block_until_ready(out)

    # Reference check in plain JAX (same semantics as sin(x) @ W.T + b)
    ref = jnp.sin(x) @ w.T + b
    assert out.shape == (batch, seq, num_outputs)
    assert jnp.allclose(out, ref, atol=1e-5, rtol=1e-5)

    print("KERNEL_OK")
</pallas_src>

<mosaic_0001>
module attributes {stable_mosaic.version = 11 : i64} {
  func.func @_train_linear_kernel(%arg0: i32, %arg1: i32, %arg2: i32, %arg3: memref<16x128xf32, #tpu.memory_space<vmem>>, %arg4: memref<128x128xf32, #tpu.memory_space<vmem>>, %arg5: memref<1x128xf32, #tpu.memory_space<vmem>>, %arg6: memref<16x128xf32, #tpu.memory_space<vmem>>, %arg7: memref<16x128xf32, #tpu.memory_space<vmem>>) attributes {dimension_semantics = [#tpu.dimension_semantics<parallel>, #tpu.dimension_semantics<parallel>, #tpu.dimension_semantics<arbitrary>], iteration_bounds = array<i64: 1, 1, 1>, scalar_prefetch = 0 : i64, scratch_operands = 1 : i64, tpu.core_type = #tpu.core_type<tc>, window_params = [{transform_indices = @transform_0, window_bounds = array<i64: 16, 128>}, {transform_indices = @transform_1, window_bounds = array<i64: 128, 128>}, {transform_indices = @transform_2, window_bounds = array<i64: 1, 128>}, {transform_indices = @transform_3, window_bounds = array<i64: 16, 128>}]} {
    %c0_i32 = arith.constant 0 : i32
    %0 = arith.cmpi eq, %arg2, %c0_i32 : i32
    %1 = arith.extui %0 : i1 to i32
    %c0_i32_0 = arith.constant 0 : i32
    %2 = arith.cmpi ne, %1, %c0_i32_0 : i32
    scf.if %2 {
      %cst_10 = arith.constant 0.000000e+00 : f32
      %13 = vector.broadcast %cst_10 : f32 to vector<16x128xf32>
      %c0_11 = arith.constant 0 : index
      %c0_12 = arith.constant 0 : index
      %14 = vector.load %arg7[%c0_11, %c0_12] : memref<16x128xf32, #tpu.memory_space<vmem>>, vector<16x128xf32>
      tpu.vector_store %arg7[%c0_11, %c0_12], %13 {strides = array<i32>} : memref<16x128xf32, #tpu.memory_space<vmem>>, vector<16x128xf32>,
    } else {
    }
    %c0 = arith.constant 0 : index
    %c0_1 = arith.constant 0 : index
    %3 = vector.load %arg3[%c0, %c0_1] : memref<16x128xf32, #tpu.memory_space<vmem>>, vector<16x128xf32>
    %4 = math.sin %3 : vector<16x128xf32>
    %c0_2 = arith.constant 0 : index
    %c0_3 = arith.constant 0 : index
    %5 = vector.load %arg7[%c0_2, %c0_3] : memref<16x128xf32, #tpu.memory_space<vmem>>, vector<16x128xf32>
    %c0_4 = arith.constant 0 : index
    %c0_5 = arith.constant 0 : index
    %6 = vector.load %arg4[%c0_4, %c0_5] : memref<128x128xf32, #tpu.memory_space<vmem>>, vector<128x128xf32>
    %cst = arith.constant dense<0.000000e+00> : vector<16x128xf32>
    %7 = tpu.matmul %4, %6, %cst {dimension_numbers = #tpu.dot_dimension_numbers<[1], [0], [0], [1], [0, 0, 1, 1], [], []>} : vector<16x128xf32>, vector<128x128xf32>, vector<16x128xf32> -> vector<16x128xf32>
    %8 = arith.addf %5, %7 : vector<16x128xf32>
    %c0_6 = arith.constant 0 : index
    %c0_7 = arith.constant 0 : index
    %9 = vector.load %arg7[%c0_6, %c0_7] : memref<16x128xf32, #tpu.memory_space<vmem>>, vector<16x128xf32>
    tpu.vector_store %arg7[%c0_6, %c0_7], %8 {strides = array<i32>} : memref<16x128xf32, #tpu.memory_space<vmem>>, vector<16x128xf32>,
    %c0_i32_8 = arith.constant 0 : i32
    %10 = arith.cmpi eq, %arg2, %c0_i32_8 : i32
    %11 = arith.extui %10 : i1 to i32
    %c0_i32_9 = arith.constant 0 : i32
    %12 = arith.cmpi ne, %11, %c0_i32_9 : i32
    scf.if %12 {
      %c0_10 = arith.constant 0 : index
      %c0_11 = arith.constant 0 : index
      %13 = vector.load %arg7[%c0_10, %c0_11] : memref<16x128xf32, #tpu.memory_space<vmem>>, vector<16x128xf32>
      %c0_12 = arith.constant 0 : index
      %c0_13 = arith.constant 0 : index
      %14 = vector.load %arg5[%c0_12, %c0_13] : memref<1x128xf32, #tpu.memory_space<vmem>>, vector<1x128xf32>
      %15 = vector.broadcast %14 : vector<1x128xf32> to vector<16x128xf32>
      %16 = arith.addf %13, %15 : vector<16x128xf32>
      %c0_14 = arith.constant 0 : index
      %c0_15 = arith.constant 0 : index
      %17 = vector.load %arg6[%c0_14, %c0_15] : memref<16x128xf32, #tpu.memory_space<vmem>>, vector<16x128xf32>
      tpu.vector_store %arg6[%c0_14, %c0_15], %16 {strides = array<i32>} : memref<16x128xf32, #tpu.memory_space<vmem>>, vector<16x128xf32>,
    } else {
    }
    return
  }
  func.func @transform_0(%arg0: i32, %arg1: i32, %arg2: i32) -> (i32, i32) {
    %c0_i32 = arith.constant 0 : i32
    return %arg0, %arg2 : i32, i32
  }
  func.func @transform_1(%arg0: i32, %arg1: i32, %arg2: i32) -> (i32, i32) {
    %c0_i32 = arith.constant 0 : i32
    return %arg2, %arg1 : i32, i32
  }
  func.func @transform_2(%arg0: i32, %arg1: i32, %arg2: i32) -> (i32, i32) {
    %c0_i32 = arith.constant 0 : i32
    %c0_i32_0 = arith.constant 0 : i32
    return %c0_i32, %arg1 : i32, i32
  }
  func.func @transform_3(%arg0: i32, %arg1: i32, %arg2: i32) -> (i32, i32) {
    %c0_i32 = arith.constant 0 : i32
    return %arg0, %arg1 : i32, i32
  }
}

</mosaic_0001>

<bundles_post_ra>
// kernel: tpu_custom_call.1
= control target key start
LH: loop header
LB: loop body
LE: loop exit
PB: predicated region body
PF: predicated region fallthrough
CT: control target
= control target key end

     0   :  { %8 = vsyncpa [#allocation4], 0  ;;  %s715_s0 = inlined_call_operand.hbm [shape: f32[16,128], index: 0, kind: input, shape index: {}]   ;;  %s716_s1 = inlined_call_operand.hbm [shape: f32[128,128], index: 1, kind: input, shape index: {}]   ;;  %s717_s2 = inlined_call_operand.vmem [shape: f32[1,128], index: 2, kind: input, shape index: {}]   ;;  %s718_s3 = inlined_call_operand.hbm [shape: f32[16,128], index: 3, kind: output, shape index: {}]  }
   0x1   :  { %9 = vsyncpa [#allocation7], 0 }
   0x2   :  { %10 = vsyncpa [#allocation5], 0  ;;  %s545_s12 = smov [#allocation3]  }
   0x3   :  { %s16_s13 = sshll.u32 %s545_s12, 4  ;;  %s17_s13 = int_to_ptr.vmem [resolvable:$true] %s16_s13 }
   0x4   :  { %s487_s14 = scalar_lea.vmem %s17_s13, 256  ;;  %p492_p1 = scmp.lt.s32.totalorder %s17_s13, %s17_s13 }
   0x5   :  { %p488_p0 = scmp.ne.s32.totalorder %s17_s13, %s487_s14  ;;  %p493_p2 = scmp.lt.s32.totalorder %s487_s14, %s487_s14 }
   0x7   :  { %p494_p3 = por %p493_p2, %p492_p1 }
   0x9   :  { %p495_p4 = pnand %p494_p3, %p488_p0 }
   0xb   :  { %498 = shalt.err (!%p495_p4)
}
   0xc   :  { %s546_s15 = smov 128   ;;  %s547_s16 = smov 8  }
   0xd   :  { %22 = dma.hbm_to_vmem [thread:$0]  %s715_s0, 256, %s17_s13, [#allocation4], %s546_s15, %s546_s15, %s547_s16  }
   0xe   :  { %s548_s19 = smov [#allocation6]  }
   0xf   :  { %s28_s20 = sshll.u32 %s548_s19, 4  ;;  %s29_s20 = int_to_ptr.vmem [resolvable:$true] %s28_s20 }
  0x10   :  { %s507_s21 = scalar_lea.vmem %s29_s20, 2048  ;;  %p512_p6 = scmp.lt.s32.totalorder %s29_s20, %s29_s20 }
  0x11   :  { %p508_p5 = scmp.ne.s32.totalorder %s29_s20, %s507_s21  ;;  %p513_p7 = scmp.lt.s32.totalorder %s507_s21, %s507_s21 }
  0x13   :  { %p514_p8 = por %p513_p7, %p512_p6 }
  0x15   :  { %p515_p9 = pnand %p514_p8, %p508_p5 }
  0x17   :  { %518 = shalt.err (!%p515_p9)
}
  0x18   :  { %34 = dma.hbm_to_vmem [thread:$0]  %s716_s1, 2048, %s29_s20, [#allocation7], %s546_s15, %s546_s15, %s547_s16  }
  0x19   :  { %539 = dma.done.wait [#allocation4], 256  }
  0x1a   :  { %540 = vsyncadd [#allocation4], 4294967040 }
  0x1b   :  { %541 = dma.done.wait [#allocation7], 2048  }
  0x1c   :  { %542 = vsyncadd [#allocation7], 4294965248  ;;  %v276_v0 = vld [vmem:[#allocation6 + $0x78] sm:$0xff]  ;;  %v275_v1 = vld [vmem:[#allocation6 + $0x70] sm:$0xff]  ;;  %v549_v35 = vmov 683565275  }
  0x1d   :  { %417 = vmatprep.subr.mxu0 %v276_v0  ;;  %v274_v2 = vld [vmem:[#allocation6 + $0x68] sm:$0xff]  ;;  %v273_v3 = vld [vmem:[#allocation6 + $0x60] sm:$0xff]  ;;  %v588_v4 = vld [vmem:[#allocation3] sm:$0xff]  ;;  %v550_v37 = vmov 2475754826   ;;  %s555_s24 = smov [#allocation8]  }
  0x1e   :  { %418 = vmatpush3.msra.mxu0 %v276_v0  ;;  %v590_v5 = vld [vmem:[#allocation3 + $0x8] sm:$0xff]  ;;  %v51_v7 = vand.u32 2147483647, %v588_v4  ;;  %v54_v8 = vand.u32 2139095040, %v588_v4  ;;  %v271_v11 = vld [vmem:[#allocation6 + $0x50] sm:$0xff]  ;;  %v270_v16 = vld [vmem:[#allocation6 + $0x48] sm:$0xff] }
  0x1f   :  { %419 = vmatprep.subr.mxu0 %v275_v1  ;;  %v272_v6 = vld [vmem:[#allocation6 + $0x58] sm:$0xff]  ;;  %v155_v9 = vand.u32 2147483647, %v590_v5  ;;  %v158_v10 = vand.u32 2139095040, %v590_v5  ;;  %v269_v19 = vld [vmem:[#allocation6 + $0x40] sm:$0xff]  ;;  %v267_v26 = vld [vmem:[#allocation6 + $0x30] sm:$0xff] }
  0x20   :  { %420 = vmatpush3.msra.mxu0 %v275_v1  ;;  %v55_v12 = vshrl.u32 %v54_v8, 23  ;;  %v58_v13 = vand.u32 8388607, %v51_v7  ;;  %v268_v24 = vld [vmem:[#allocation6 + $0x38] sm:$0xff]  ;;  %v266_v33 = vld [vmem:[#allocation6 + $0x28] sm:$0xff]  ;;  %v265_v46 = vld [vmem:[#allocation6 + $0x20] sm:$0xff] }
  0x21   :  { %421 = vmatprep.subr.mxu0 %v274_v2  ;;  %v159_v14 = vshrl.u32 %v158_v10, 23  ;;  %v162_v15 = vand.u32 8388607, %v155_v9  ;;  %v551_v39 = vmov 2131351028   ;;  %v264_v54 = vld [vmem:[#allocation6 + $0x18] sm:$0xff] }
  0x22   :  { %422 = vmatpush3.msra.mxu0 %v274_v2  ;;  %v390_v17 = vadd.s32 4294967169, %v55_v12  ;;  %v59_v21 = vor.u32 8388608, %v58_v13  ;;  %v552_v41 = vmov 2102212464   ;;  %v553_v43 = vmov 920167782  }
  0x23   :  { %423 = vmatprep.subr.mxu0 %v273_v3  ;;  %v394_v18 = vadd.s32 4294967169, %v159_v14  ;;  %v163_v22 = vor.u32 8388608, %v162_v15  ;;  %v554_v52 = vmov 1326507024   ;;  %v263_v62 = vld [vmem:[#allocation6 + $0x10] sm:$0xff]  ;;  %vm53_vm14 = vcmp.lt.s32.totalorder %v588_v4, 0 }
  0x24   :  { %424 = vmatpush3.msra.mxu0 %v273_v3  ;;  %v61_v20 = vadd.s32 1, %v390_v17  ;;  %v602_v30 = vshll.u32 %v59_v21, 8  ;;  %vm691_vm15 = vcmp.le.f32.partialorder %v51_v7, 0.7853982  ;;  %s377_s25 = sshll.u32 %s555_s24, 4  ;;  %s378_s25 = int_to_ptr.vmem [resolvable:$true] %s377_s25 }
  0x25   :  { %425 = vmatprep.subr.mxu0 %v272_v6  ;;  %v165_v23 = vadd.s32 1, %v394_v18  ;;  %v606_v32 = vshll.u32 %v163_v22, 8  ;;  %s519_s26 = scalar_lea.vmem %s378_s25, 256  ;;  %p524_p11 = scmp.lt.s32.totalorder %s378_s25, %s378_s25 }
  0x26   :  { %426 = vmatpush3.msra.mxu0 %v272_v6  ;;  %vm62_vm0 = vcmp.gt.s32.totalorder %v61_v20, 0  ;;  %p520_p10 = scmp.ne.s32.totalorder %s378_s25, %s519_s26  ;;  %p525_p12 = scmp.lt.s32.totalorder %s519_s26, %s519_s26 }
  0x27   :  { %427 = vmatprep.subr.mxu0 %v271_v11  ;;  %v63_v25 = vsel %vm62_vm0, %v61_v20, 0  ;;  %vm166_vm1 = vcmp.gt.s32.totalorder %v165_v23, 0  ;;  %v261_v20 = vld [vmem:[#allocation6] sm:$0xff]  ;;  %vm157_vm0 = vcmp.lt.s32.totalorder %v590_v5, 0 }
  0x28   :  { %428 = vmatpush3.msra.mxu0 %v271_v11  ;;  %v600_v27 = vshrl.u32 %v63_v25, 5  ;;  %v65_v28 = vand.u32 31, %v63_v25  ;;  %v167_v29 = vsel %vm166_vm1, %v165_v23, 0  ;;  %v262_v11 = vld [vmem:[#allocation6 + $0x8] sm:$0xff]  ;;  %vm156_vm1 = vcmp.le.f32.partialorder %v155_v9, 0.7853982  ;;  %p526_p13 = por %p525_p12, %p524_p11 }
  0x29   :  { %429 = vmatprep.subr.mxu0 %v270_v16  ;;  %v604_v31 = vand.u32 31, %v167_v29  ;;  %v611_v45 = vshrl.u32 %v167_v29, 5 }
  0x2a   :  { %430 = vmatpush3.msra.mxu0 %v270_v16  ;;  %v66_v34 = vsub.s32 32, %v65_v28  ;;  %v68_v36 = vshll.u32 %v549_v35, %v65_v28  ;;  %v71_v38 = vshll.u32 %v550_v37, %v65_v28  ;;  %v74_v40 = vshll.u32 %v551_v39, %v65_v28  ;;  %p527_p0 = pnand %p526_p13, %p520_p10 }
  0x2b   :  { %431 = vmatprep.subr.mxu0 %v269_v19  ;;  %v77_v42 = vshll.u32 %v552_v41, %v65_v28  ;;  %v80_v44 = vshll.u32 %v553_v43, %v65_v28  ;;  %vm83_vm2 = vcmp.lt.s32.totalorder %v600_v27, 1  ;;  %vm84_vm3 = vcmp.lt.s32.totalorder %v600_v27, 2 }
  0x2c   :  { %432 = vmatpush3.msra.mxu0 %v269_v19  ;;  %v67_v47 = vshrl.u32 %v549_v35, %v66_v34  ;;  %v69_v48 = vshrl.u32 %v550_v37, %v66_v34  ;;  %v72_v49 = vshrl.u32 %v551_v39, %v66_v34  ;;  %v75_v50 = vshrl.u32 %v552_v41, %v66_v34 }
  0x2d   :  { %433 = vmatprep.subr.mxu0 %v268_v24  ;;  %v78_v51 = vshrl.u32 %v553_v43, %v66_v34  ;;  %v81_v53 = vshrl.u32 %v554_v52, %v66_v34  ;;  %vm86_vm4 = vcmp.lt.s32.totalorder %v600_v27, 4  ;;  %v170_v58 = vsub.s32 32, %v604_v31 }
  0x2e   :  { %434 = vmatpush3.msra.mxu0 %v268_v24  ;;  %v70_v55 = vor.u32 %v69_v48, %v68_v36  ;;  %v73_v56 = vor.u32 %v72_v49, %v71_v38  ;;  %v76_v57 = vor.u32 %v75_v50, %v74_v40  ;;  %vm85_vm5 = vcmp.lt.s32.totalorder %v600_v27, 3 }
  0x2f   :  { %435 = vmatprep.subr.mxu0 %v267_v26  ;;  %v79_v59 = vor.u32 %v78_v51, %v77_v42  ;;  %v82_v60 = vor.u32 %v81_v53, %v80_v44  ;;  %v172_v61 = vshll.u32 %v549_v35, %v604_v31  ;;  %v175_v10 = vshll.u32 %v550_v37, %v604_v31 }
  0x30   :  { %436 = vmatpush3.msra.mxu0 %v267_v26  ;;  %v87_v63 = vsel %vm83_vm2, %v67_v47, %v70_v55  ;;  %v88_v0 = vsel %vm86_vm4, %v76_v57, 2102212464  ;;  %v91_v1 = vsel %vm83_vm2, %v70_v55, %v73_v56  ;;  %v95_v2 = vsel %vm83_vm2, %v73_v56, %v76_v57 }
  0x31   :  { %437 = vmatprep.subr.mxu0 %v266_v33  ;;  %v89_v3 = vsel %vm85_vm5, %v73_v56, %v88_v0  ;;  %v92_v6 = vsel %vm86_vm4, %v79_v59, 920167782  ;;  %v96_v8 = vsel %vm86_vm4, %v82_v60, 1326507024  ;;  %v171_v14 = vshrl.u32 %v549_v35, %v170_v58 }
  0x32   :  { %438 = vmatpush3.msra.mxu0 %v266_v33  ;;  %v93_v12 = vsel %vm85_vm5, %v76_v57, %v92_v6  ;;  %v97_v13 = vsel %vm85_vm5, %v79_v59, %v96_v8  ;;  %v173_v15 = vshrl.u32 %v550_v37, %v170_v58  ;;  %v90_v16 = vsel %vm84_vm3, %v87_v63, %v89_v3 }
  0x33   :  { %439 = vmatprep.subr.mxu0 %v265_v46  ;;  %v94_v17 = vsel %vm84_vm3, %v91_v1, %v93_v12  ;;  %v98_v18 = vsel %vm84_vm3, %v95_v2, %v97_v13  ;;  %v176_v19 = vshrl.u32 %v551_v39, %v170_v58  ;;  %v178_v28 = vshll.u32 %v551_v39, %v604_v31 }
  0x34   :  { %440 = vmatpush3.msra.mxu0 %v265_v46  ;;  %v646_v21 = vmul.u32.u64.low %v602_v30, %v98_v18  ;;  %v647_v22 = vmul.u32.u64.high %v602_v30, %v98_v18, %v646_v21  ;;  %v650_v23 = vmul.u32.u64.low %v602_v30, %v94_v17  ;;  %v651_v24 = vmul.u32.u64.high %v602_v30, %v94_v17, %v650_v23 }
  0x35   :  { %441 = vmatprep.subr.mxu0 %v264_v54  ;;  %v174_v25 = vor.u32 %v173_v15, %v172_v61  ;;  %v177_v26 = vor.u32 %v176_v19, %v175_v10  ;;  %v179_v29 = vshrl.u32 %v552_v41, %v170_v58  ;;  %v181_v27 = vshll.u32 %v552_v41, %v604_v31 }
  0x36   :  { %442 = vmatpush3.msra.mxu0 %v264_v54  ;;  %v182_v33 = vshrl.u32 %v553_v43, %v170_v58  ;;  %v184_v34 = vshll.u32 %v553_v43, %v604_v31  ;;  %v185_v35 = vshrl.u32 %v554_v52, %v170_v58  ;;  %v106_v36 = vmul.u32 %v602_v30, %v90_v16 }
  0x37   :  { %443 = vmatprep.subr.mxu0 %v263_v62  ;;  %v180_v37 = vor.u32 %v179_v29, %v178_v28  ;;  %vm187_vm6 = vcmp.lt.s32.totalorder %v611_v45, 1  ;;  %vm188_vm7 = vcmp.lt.s32.totalorder %v611_v45, 2  ;;  %vm108_vm8 = vc.u32 %v647_v22, %v650_v23 }
  0x38   :  { %444 = vmatpush3.msra.mxu0 %v263_v62  ;;  %v109_v38 = vadd.s32 1, %v651_v24  ;;  %v183_v39 = vor.u32 %v182_v33, %v181_v27  ;;  %vm189_vm9 = vcmp.lt.s32.totalorder %v611_v45, 3  ;;  %v186_v40 = vor.u32 %v185_v35, %v184_v34 }
  0x39   :  { %445 = vmatprep.subr.mxu0 %v262_v11  ;;  %vm190_vm10 = vcmp.lt.s32.totalorder %v611_v45, 4  ;;  %v191_v31 = vsel %vm187_vm6, %v171_v14, %v174_v25  ;;  %v195_v41 = vsel %vm187_vm6, %v174_v25, %v177_v26  ;;  %v199_v44 = vsel %vm187_vm6, %v177_v26, %v180_v37 }
  0x3a   :  { %446 = vmatpush3.msra.mxu0 %v262_v11  ;;  %v110_v30 = vsel %vm108_vm8, %v109_v38, %v651_v24  ;;  %v192_v42 = vsel %vm190_vm10, %v180_v37, 2102212464  ;;  %v196_v43 = vsel %vm190_vm10, %v183_v39, 920167782  ;;  %v200_v49 = vsel %vm190_vm10, %v186_v40, 1326507024 }
  0x3b   :  { %447 = vmatprep.subr.mxu0 %v261_v20  ;;  %v111_v46 = vadd.s32 %v110_v30, %v106_v36  ;;  %v193_v47 = vsel %vm189_vm9, %v177_v26, %v192_v42  ;;  %v197_v48 = vsel %vm189_vm9, %v180_v37, %v196_v43  ;;  %v201_v52 = vsel %vm189_vm9, %v183_v39, %v200_v49 }
  0x3c   :  { %448 = vmatpush3.msra.mxu0 %v261_v20  ;;  %v194_v50 = vsel %vm188_vm7, %v191_v31, %v193_v47  ;;  %v198_v51 = vsel %vm188_vm7, %v195_v41, %v197_v48  ;;  %v202_v54 = vsel %vm188_vm7, %v199_v44, %v201_v52  ;;  %v107_v13 = vadd.s32 %v650_v23, %v647_v22 }
  0x3d   :  { %v112_v53 = vadd.s32 536870912, %v111_v46  ;;  %v675_v55 = vmul.u32.u64.low %v606_v32, %v198_v51  ;;  %v676_v56 = vmul.u32.u64.high %v606_v32, %v198_v51, %v675_v55  ;;  %v210_v60 = vmul.u32 %v606_v32, %v194_v50 }
  0x3e   :  { %v679_v57 = vmul.u32.u64.low %v606_v32, %v202_v54  ;;  %v680_v58 = vmul.u32.u64.high %v606_v32, %v202_v54, %v679_v57  ;;  %vm143_vm5 = vweird.f32 %v588_v4  ;;  %vm247_vm9 = vweird.f32 %v590_v5 }
  0x3f   :  { %v113_v59 = vshrl.u32 %v112_v53, 30  ;;  %v213_v62 = vadd.s32 1, %v676_v56 }
  0x40   :  { %vm212_vm11 = vc.u32 %v680_v58, %v675_v55  ;;  %v211_v27 = vadd.s32 %v675_v55, %v680_v58 }
  0x41   :  { %v114_v61 = vshll.u32 %v113_v59, 30  ;;  %v214_v45 = vsel %vm212_vm11, %v213_v62, %v676_v56  ;;  %v137_v37 = vsub.s32 4, %v113_v59 }
  0x42   :  { %v215_v0 = vadd.s32 %v214_v45, %v210_v60 }
  0x43   :  { %v115_v63 = vsub.s32 %v111_v46, %v114_v61  ;;  %v138_v43 = vsel %vm53_vm14, %v137_v37, %v113_v59 }
  0x44   :  { %v216_v2 = vadd.s32 536870912, %v215_v0  ;;  %v140_v7 = vsel %vm691_vm15, 0, %v138_v43 }
  0x45   :  { %v117_v1 = vsub.s32 0, %v115_v63  ;;  %v144_v51 = vadd.s32 3, %v140_v7 }
  0x46   :  { %v217_v6 = vshrl.u32 %v216_v2, 30 }
  0x47   :  { %v391_v3 = vmin.u32 %v117_v1, %v115_v63  ;;  %v145_v56 = vand.u32 3, %v144_v51 }
  0x48   :  { %v218_v10 = vshll.u32 %v217_v6, 30  ;;  %v241_v50 = vsub.s32 4, %v217_v6 }
  0x49   :  { %v119_v8 = vclz %v391_v3  ;;  %vm150_vm2 = vcmp.eq.s32.totalorder %v145_v56, 2  ;;  %vm147_vm3 = vcmp.eq.s32.totalorder %v145_v56, 0  ;;  %vm146_vm4 = vcmp.lt.s32.totalorder %v145_v56, 2 }
  0x4a   :  { %v219_v12 = vsub.s32 %v215_v0, %v218_v10  ;;  %v242_v54 = vsel %vm157_vm0, %v241_v50, %v217_v6 }
  0x4b   :  { %v392_v11 = vadd.s32 4294967294, %v119_v8  ;;  %v244_v57 = vsel %vm156_vm1, 0, %v242_v54 }
  0x4c   :  { %v221_v14 = vsub.s32 0, %v219_v12  ;;  %v248_v61 = vadd.s32 3, %v244_v57 }
  0x4d   :  { %vm393_vm12 = vcmp.lt.s32.totalorder %v392_v11, 0 }
  0x4e   :  { %v122_v32 = vsel %vm393_vm12, 0, %v392_v11  ;;  %v395_v18 = vmin.u32 %v221_v14, %v219_v12  ;;  %v249_v0 = vand.u32 3, %v248_v61 }
  0x4f   :  { %v123_v15 = vsub.s32 32, %v122_v32  ;;  %v124_v16 = vshll.u32 %v115_v63, %v122_v32  ;;  %v127_v17 = vsub.s32 4294967266, %v122_v32 }
  0x50   :  { %v223_v21 = vclz %v395_v18  ;;  %vm254_vm6 = vcmp.eq.s32.totalorder %v249_v0, 2  ;;  %vm251_vm7 = vcmp.eq.s32.totalorder %v249_v0, 0  ;;  %vm250_vm8 = vcmp.lt.s32.totalorder %v249_v0, 2 }
  0x51   :  { %v125_v19 = vshrl.u32 %v107_v13, %v123_v15  ;;  %v128_v20 = vadd.s32 127, %v127_v17 }
  0x52   :  { %v396_v26 = vadd.s32 4294967294, %v223_v21 }
  0x53   :  { %v126_v24 = vor.u32 %v125_v19, %v124_v16  ;;  %v129_v25 = vshll.u32 %v128_v20, 23 }
  0x54   :  { %vm397_vm13 = vcmp.lt.s32.totalorder %v396_v26, 0 }
  0x55   :  { %v130_v28 = vor.u32 4788187, %v129_v25  ;;  %v133_v29 = vcvt.s32.f32 %v126_v24  ;;  %v226_v22 = vsel %vm397_vm13, 0, %v396_v26 }
  0x56   :  { %v227_v23 = vsub.s32 32, %v226_v22  ;;  %v228_v34 = vshll.u32 %v219_v12, %v226_v22  ;;  %v231_v35 = vsub.s32 4294967266, %v226_v22 }
  0x57   :  { %v131_v33 = vand.u32 2147483647, %v130_v28 }
  0x58   :  { %v229_v38 = vshrl.u32 %v211_v27, %v227_v23  ;;  %v232_v39 = vadd.s32 127, %v231_v35 }
  0x59   :  { %v134_v36 = vmul.f32 %v133_v29, %v131_v33 }
  0x5a   :  { %v230_v41 = vor.u32 %v229_v38, %v228_v34  ;;  %v233_v30 = vshll.u32 %v232_v39, 23 }
  0x5b   :  { %v135_v31 = vxor.u32 2147483648, %v134_v36 }
  0x5c   :  { %v234_v46 = vor.u32 4788187, %v233_v30  ;;  %v237_v47 = vcvt.s32.f32 %v230_v41 }
  0x5d   :  { %v136_v42 = vsel %vm53_vm14, %v135_v31, %v134_v36 }
  0x5e   :  { %v139_v44 = vsel %vm691_vm15, %v588_v4, %v136_v42  ;;  %v235_v48 = vand.u32 2147483647, %v234_v46  ;;  %v398_v4 = vld [vmem:[%s717_s2] ss:$0 sm:$0xff] }
  0x5f   :  { %471 = vcosq.f32 %v139_v44 }
  0x60   :  { %473 = vsinq.f32 %v139_v44  ;;  %v238_v49 = vmul.f32 %v237_v47, %v235_v48 }
  0x62   :  { %v239_v52 = vxor.u32 2147483648, %v238_v49 }
  0x64   :  { %v240_v53 = vsel %vm157_vm0, %v239_v52, %v238_v49 }
  0x65   :  { %v243_v55 = vsel %vm156_vm1, %v590_v5, %v240_v53 }
  0x66   :  { %475 = vcosq.f32 %v243_v55 }
  0x67   :  { %477 = vsinq.f32 %v243_v55 }
  0x6c   :  { %v472_v58 = vpop.eup %471 }
  0x6d   :  { %v474_v59 = vpop.eup %473  ;;  %v151_v60 = vxor.u32 2147483648, %v472_v58 }
  0x6e   :  { %v148_v62 = vxor.u32 2147483648, %v474_v59 }
  0x6f   :  { %v152_v9 = vsel %vm150_vm2, %v151_v60, %v474_v59 }
  0x70   :  { %v149_v63 = vsel %vm147_vm3, %v472_v58, %v148_v62 }
  0x71   :  { %v153_v45 = vsel %vm146_vm4, %v149_v63, %v152_v9 }
  0x72   :  { %v154_v1 = vsel %vm143_vm5, nan, %v153_v45 }
  0x73   :  { %449 = vmatprep.mubr.f32.mxu0 %v154_v1  ;;  %v476_v2 = vpop.eup %475 }
  0x74   :  { %v478_v3 = vpop.eup %477  ;;  %v255_v6 = vxor.u32 2147483648, %v476_v2 }
  0x75   :  { %v252_v8 = vxor.u32 2147483648, %v478_v3 }
  0x76   :  { %v256_v10 = vsel %vm254_vm6, %v255_v6, %v478_v3 }
  0x77   :  { %v253_v11 = vsel %vm251_vm7, %v476_v2, %v252_v8 }
  0x78   :  { %v257_v12 = vsel %vm250_vm8, %v253_v11, %v256_v10 }
  0x79   :  { %v258_v13 = vsel %vm247_vm9, nan, %v257_v12 }
  0x7a   :  { %450 = vmatmul.mubr.f32.vlgmr.msra.gmra.mxu0 %v258_v13 }
 0x13a   :  { %v451_v32 = vpop.f32.mrf.mxu0 }
 0x13b   :  { %v369_v14 = vadd.f32 %v451_v32, %v398_v4 }
 0x13c   :  { %v343_v15 = vpop.f32.mrf.mxu0 }
 0x13d   :  { %371 = vst [vmem:[#allocation8 + $0x8] sm:$0xff] %v369_v14  ;;  %v368_v16 = vadd.f32 %v398_v4, %v343_v15 }
 0x13f   :  { %370 = vst [vmem:[#allocation8] sm:$0xff] %v368_v16 }
 0x140   :  { %530 = shalt.err (!%p527_p0)
}
 0x141   :  { %383 = dma.vmem_to_hbm [thread:$0]  %s378_s25, 256, %s718_s3, [#allocation5], %s546_s15, %s546_s15, %s547_s16  }
 0x142   :  { %543 = dma.done.wait [#allocation5], 256  }
 0x143   :  { %544 = vsyncadd [#allocation5], 4294967040 }
 0x144   :  { %387 = vsyncpa [#allocation4], 1 }
 0x145   :  { %388 = vsyncpa [#allocation7], 1 }
 0x146   :  { %389 = vsyncpa [#allocation5], 1 }

</bundles_post_ra>
